<compile_context>
chip_gen: v7x
topology: tpu7x:2x2x1
jax: 0.10.0
libtpu: 0.0.40
codegen_flags: <defaults>
</compile_context>

<pallas_src>
import functools

import jax
import jax.numpy as jnp
from jax.experimental import pallas as pl
from jax.experimental.pallas import tpu as pltpu

EPS = 1e-8
LEAKY_SLOPE = 0.2
FACTORS = [1, 1, 1, 1, 1 / 2, 1 / 4, 1 / 8, 1 / 16, 1 / 32]

_CONV_VMEM_LIMIT = 48 * 1024 * 1024   # raised scoped-VMEM cap for conv kernels
_CONV_VMEM_BUDGET = 16 * 1024 * 1024  # self-imposed working-set budget


def _round_up(x, m):
    return ((x + m - 1) // m) * m


# ----------------------------------------------------------------------------
# Pallas kernels
# ----------------------------------------------------------------------------
def _conv3x3_kernel(xb_ref, w_ref, b_ref, o_ref, *, wpad, rows, cin, cout,
                    leaky, post_pn):
    """Fused 3x3 conv (9-tap shifted matmuls) + bias + LeakyReLU + PixelNorm.

    xb_ref : ((th+2)*wpad + 8, cin) bf16 -- row band of the zero-padded input
             flattened as (padded_row * wpad + padded_col, channel).
    w_ref  : (9*cin, cout) bf16 -- taps stacked (kh, kw, cin)-major.
    b_ref  : (1, cout) f32.
    o_ref  : (rows, cout) bf16 -- "wide" output rows (th * wpad); the last two
             columns of each wpad-group are garbage and sliced off in JAX.
    """
    acc = jnp.zeros((rows, cout), jnp.float32)
    for k in range(9):
        off = (k // 3) * wpad + (k % 3)          # static shift per tap
        win = xb_ref[off:off + rows, :]          # (rows, cin) bf16 window
        acc = acc + jnp.dot(win, w_ref[k * cin:(k + 1) * cin, :],
                            preferred_element_type=jnp.float32)
    y = acc + b_ref[...]
    if leaky:
        y = jnp.where(y >= 0, y, LEAKY_SLOPE * y)
    if post_pn:  # PixelNorm over the channel (lane) axis, in f32.
        y = y * jax.lax.rsqrt(jnp.mean(y * y, axis=-1, keepdims=True) + EPS)
    o_ref[...] = y.astype(o_ref.dtype)


def _dense_kernel(x_ref, w_ref, b_ref, o_ref, *, pre_pn, leaky, post_pn):
    """o = [pn?](leaky?([pn?](x) @ w + b)).  Used for ConvT-4x4 and 1x1 convs."""
    x = x_ref[...]
    if pre_pn:
        xf = x.astype(jnp.float32)
        xf = xf * jax.lax.rsqrt(jnp.mean(xf * xf, axis=-1, keepdims=True) + EPS)
        x = xf.astype(x_ref.dtype)
    y = jnp.dot(x, w_ref[...], preferred_element_type=jnp.float32) + b_ref[...]
    if leaky:
        y = jnp.where(y >= 0, y, LEAKY_SLOPE * y)
    if post_pn:
        y = y * jax.lax.rsqrt(jnp.mean(y * y, axis=-1, keepdims=True) + EPS)
    o_ref[...] = y.astype(o_ref.dtype)


def _fade_rgb_kernel(alpha_ref, up_ref, gen_ref, wu_ref, bu_ref, wg_ref,
                     bg_ref, o_ref):
    """Fused toRGB(upscaled), toRGB(generated), alpha-blend and tanh."""
    a = alpha_ref[0, 0]                                   # scalar from SMEM
    yu = jnp.dot(up_ref[...], wu_ref[...],
                 preferred_element_type=jnp.float32) + bu_ref[...]
    yg = jnp.dot(gen_ref[...], wg_ref[...],
                 preferred_element_type=jnp.float32) + bg_ref[...]
    o_ref[...] = jnp.tanh(a * yg + (1.0 - a) * yu)


# ----------------------------------------------------------------------------
# Kernel wrappers
# ----------------------------------------------------------------------------
def _pick_band_rows(hp, wp, cin, cout):
    """Largest power-of-two row-band height whose working set fits the budget."""
    wpad = wp + 2
    lane = 128
    th = hp
    while th > 4:
        band_rows = (th + 2) * wpad + 8
        est = (2 * band_rows * max(cin, lane) * 2        # input band, 2 bufs, bf16
               + 2 * th * wpad * max(cout, lane) * 2     # output band, 2 bufs, bf16
               + th * wpad * max(cout, lane) * 4         # f32 accumulator
               + 2 * 9 * cin * max(cout, lane) * 2)      # weights
        if est <= _CONV_VMEM_BUDGET:
            break
        th //= 2
    return max(th, 4)


def ws_conv3x3(x_nhwc, p, *, leaky=True, post_pn=True):
    """WSConv2d(k=3, s=1, p=1) fused with LeakyReLU / PixelNorm epilogue."""
    n, hp, wp, cin = x_nhwc.shape
    cout = p["b"].shape[0]
    wpad = wp + 2
    th = _pick_band_rows(hp, wp, cin, cout)
    nbands = hp // th
    band_rows = (th + 2) * wpad + 8
    rows_out = th * wpad

    # Layout plumbing (JAX): zero-pad H/W by 1, flatten spatial, gather the
    # overlapping row bands ((th+2)/th duplication, vs 9x for im2col).
    # TODO(synk): fold the pad + band gather (and the preceding 2x nearest
    # upsample) into the kernel's input indexing to drop this HBM pass.
    xp = jnp.pad(x_nhwc.astype(jnp.bfloat16), ((0, 0), (1, 1), (1, 1), (0, 0)))
    xf = xp.reshape(n, (hp + 2) * wpad, cin)
    xf = jnp.pad(xf, ((0, 0), (0, 8), (0, 0)))            # tail slack for taps
    xb = jnp.stack(
        [xf[:, hb * th * wpad: hb * th * wpad + band_rows, :]
         for hb in range(nbands)], axis=1)                # (n, nbands, band, cin)

    # (O, I, 3, 3) -> (kh, kw, I, O) -> (9*I, O); fold the WS scale in.
    wmat = (p["w"] * p["scale"]).transpose(2, 3, 1, 0).reshape(9 * cin, cout)
    wmat = wmat.astype(jnp.bfloat16)
    b2 = p["b"].reshape(1, cout).astype(jnp.float32)

    kernel = functools.partial(_conv3x3_kernel, wpad=wpad, rows=rows_out,
                               cin=cin, cout=cout, leaky=leaky, post_pn=post_pn)
    wide = pl.pallas_call(
        kernel,
        out_shape=jax.ShapeDtypeStruct((n, hp * wpad, cout), jnp.bfloat16),
        grid=(n, nbands),
        in_specs=[
            pl.BlockSpec((None, None, band_rows, cin), lambda i, j: (i, j, 0, 0)),
            pl.BlockSpec((9 * cin, cout), lambda i, j: (0, 0)),
            pl.BlockSpec((1, cout), lambda i, j: (0, 0)),
        ],
        out_specs=pl.BlockSpec((None, rows_out, cout), lambda i, j: (i, j, 0)),
        compiler_params=pltpu.CompilerParams(
            dimension_semantics=("parallel", "parallel"),
            vmem_limit_bytes=_CONV_VMEM_LIMIT),
    )(xb, wmat, b2)

    # Drop the two garbage columns per padded row (pure layout, fused by XLA).
    return wide.reshape(n, hp, wpad, cout)[:, :, :wp, :]


def fused_dense(x, w, b, *, pre_pn=False, leaky=False, post_pn=False,
                out_dtype=jnp.bfloat16):
    """Row-tiled matmul + bias with fused PixelNorm / LeakyReLU epilogue."""
    m, k = x.shape
    n_out = w.shape[1]
    x = x.astype(jnp.bfloat16)
    w = w.astype(jnp.bfloat16)
    b2 = b.reshape(1, n_out).astype(jnp.float32)

    tm = 512 if m >= 512 else _round_up(m, 8)
    m_pad = _round_up(m, tm)
    if m_pad != m:
        x = jnp.pad(x, ((0, m_pad - m), (0, 0)))

    kernel = functools.partial(_dense_kernel, pre_pn=pre_pn, leaky=leaky,
                               post_pn=post_pn)
    out = pl.pallas_call(
        kernel,
        out_shape=jax.ShapeDtypeStruct((m_pad, n_out), out_dtype),
        grid=(m_pad // tm,),
        in_specs=[
            pl.BlockSpec((tm, k), lambda i: (i, 0)),
            pl.BlockSpec((k, n_out), lambda i: (0, 0)),
            pl.BlockSpec((1, n_out), lambda i: (0, 0)),
        ],
        out_specs=pl.BlockSpec((tm, n_out), lambda i: (i, 0)),
        compiler_params=pltpu.CompilerParams(dimension_semantics=("parallel",)),
    )(x, w, b2)
    return out[:m]


def fused_rgb_fade(alpha, up_nhwc, gen_nhwc, p_up, p_gen):
    """tanh(alpha * rgb(gen) + (1 - alpha) * rgb(up)), one pass, alpha in SMEM."""
    n, h, w, cu = up_nhwc.shape
    cg = gen_nhwc.shape[-1]
    cimg = p_up["b"].shape[0]
    m = n * h * w
    up = up_nhwc.reshape(m, cu).astype(jnp.bfloat16)
    gen = gen_nhwc.reshape(m, cg).astype(jnp.bfloat16)

    tm = 512 if m >= 512 else _round_up(m, 8)
    m_pad = _round_up(m, tm)
    if m_pad != m:
        up = jnp.pad(up, ((0, m_pad - m), (0, 0)))
        gen = jnp.pad(gen, ((0, m_pad - m), (0, 0)))

    wu = (p_up["w"][:, :, 0, 0] * p_up["scale"]).T.astype(jnp.bfloat16)
    wg = (p_gen["w"][:, :, 0, 0] * p_gen["scale"]).T.astype(jnp.bfloat16)
    bu = p_up["b"].reshape(1, cimg).astype(jnp.float32)
    bg = p_gen["b"].reshape(1, cimg).astype(jnp.float32)
    alpha_arr = jnp.asarray(alpha, jnp.float32).reshape(1, 1)

    out = pl.pallas_call(
        _fade_rgb_kernel,
        out_shape=jax.ShapeDtypeStruct((m_pad, cimg), jnp.float32),
        grid=(m_pad // tm,),
        in_specs=[
            pl.BlockSpec(memory_space=pltpu.MemorySpace.SMEM),   # alpha (1,1)
            pl.BlockSpec((tm, cu), lambda i: (i, 0)),
            pl.BlockSpec((tm, cg), lambda i: (i, 0)),
            pl.BlockSpec((cu, cimg), lambda i: (0, 0)),
            pl.BlockSpec((1, cimg), lambda i: (0, 0)),
            pl.BlockSpec((cg, cimg), lambda i: (0, 0)),
            pl.BlockSpec((1, cimg), lambda i: (0, 0)),
        ],
        out_specs=pl.BlockSpec((tm, cimg), lambda i: (i, 0)),
        compiler_params=pltpu.CompilerParams(dimension_semantics=("parallel",)),
    )(alpha_arr, up, gen, wu, bu, wg, bg)
    return out[:m].reshape(n, h, w, cimg)


def ws_conv1x1(x_nhwc, p, *, out_dtype=jnp.float32):
    """WSConv2d(k=1, s=1, p=0): pure channel matmul (steps == 0 RGB path)."""
    n, h, w, c = x_nhwc.shape
    wmat = (p["w"][:, :, 0, 0] * p["scale"]).T
    y = fused_dense(x_nhwc.reshape(n * h * w, c), wmat, p["b"],
                    out_dtype=out_dtype)
    return y.reshape(n, h, w, -1)


# ----------------------------------------------------------------------------
# Plain-JAX glue (layout / data movement only)
# ----------------------------------------------------------------------------
def upsample_nearest2x(x_nhwc):
    # TODO(synk): fold nearest upsample into the next conv's input indexing
    # instead of materializing the 4x activation in HBM.
    return jnp.repeat(jnp.repeat(x_nhwc, 2, axis=1), 2, axis=2)


def conv_block(x_nhwc, p):
    # TODO(synk): fuse conv1+conv2 into one kernel keeping the intermediate
    # activation in VMEM (per spatial band with a 1-pixel halo).
    x = ws_conv3x3(x_nhwc, p["conv1"], leaky=True, post_pn=True)
    x = ws_conv3x3(x, p["conv2"], leaky=True, post_pn=True)
    return x


# ----------------------------------------------------------------------------
# Parameter construction (deterministic, shapes per the PyTorch __init__)
# ----------------------------------------------------------------------------
def _ws_params(key, in_c, out_c, k):
    w = jax.random.normal(key, (out_c, in_c, k, k), jnp.float32)  # nn.init.normal_
    b = jnp.zeros((out_c,), jnp.float32)                          # nn.init.zeros_
    scale = (2.0 / (in_c * k * k)) ** 0.5
    return {"w": w, "b": b, "scale": jnp.float32(scale)}


def init_generator_params(key, z_dim, in_channels, img_channels=3):
    keys = jax.random.split(key, 64)
    ki = iter(keys)
    params = {}
    # nn.ConvTranspose2d(z_dim, in_channels, 4, 1, 0): weight (z_dim, in_ch, 4, 4)
    params["init_convT"] = {
        "w": jax.random.normal(next(ki), (z_dim, in_channels, 4, 4), jnp.float32) * 0.1,
        "b": jax.random.normal(next(ki), (in_channels,), jnp.float32) * 0.01,
    }
    params["init_ws"] = _ws_params(next(ki), in_channels, in_channels, 3)

    chans = [int(in_channels * f) for f in FACTORS]
    params["rgb"] = [_ws_params(next(ki), chans[0], img_channels, 1)]
    params["prog"] = []
    for i in range(len(FACTORS) - 1):
        c_in, c_out = chans[i], chans[i + 1]
        params["prog"].append({
            "conv1": _ws_params(next(ki), c_in, c_out, 3),
            "conv2": _ws_params(next(ki), c_out, c_out, 3),
        })
        params["rgb"].append(_ws_params(next(ki), c_out, img_channels, 1))
    return params


# ----------------------------------------------------------------------------
# Generator forward
# ----------------------------------------------------------------------------
def generator_forward(params, x_nchw, alpha, steps):
    n, z_dim = x_nchw.shape[0], x_nchw.shape[1]
    x = x_nchw.reshape(n, z_dim)  # latent has 1x1 spatial extent

    # initial: PixelNorm -> ConvTranspose2d(4,1,0) -> LeakyReLU  (one fused call)
    in_ch = params["init_convT"]["b"].shape[0]
    wt = params["init_convT"]["w"].reshape(z_dim, in_ch * 16)   # out[n, o*16 + s]
    bt = jnp.repeat(params["init_convT"]["b"], 16)
    y = fused_dense(x, wt, bt, pre_pn=True, leaky=True)         # (n, in_ch*16)
    out = y.reshape(n, in_ch, 4, 4).transpose(0, 2, 3, 1)       # -> NHWC (n,4,4,C)
    # ... -> WSConv2d(3x3) -> LeakyReLU -> PixelNorm
    out = ws_conv3x3(out, params["init_ws"], leaky=True, post_pn=True)

    if steps == 0:
        rgb = ws_conv1x1(out, params["rgb"][0], out_dtype=jnp.float32)
        return rgb.transpose(0, 3, 1, 2)                        # back to NCHW

    upscaled = out
    for step in range(steps):
        upscaled = upsample_nearest2x(out)
        out = conv_block(upscaled, params["prog"][step])

    faded = fused_rgb_fade(alpha, upscaled, out,
                           params["rgb"][steps - 1], params["rgb"][steps])
    return faded.transpose(0, 3, 1, 2)                          # back to NCHW


# ----------------------------------------------------------------------------
if __name__ == "__main__":
    Z_DIM, IN_CHANNELS, IMG_CHANNELS = 32, 32, 3
    BATCH, STEPS, ALPHA = 2, 2, 0.6

    key = jax.random.PRNGKey(0)
    pkey, xkey = jax.random.split(key)
    params = init_generator_params(pkey, Z_DIM, IN_CHANNELS, IMG_CHANNELS)
    x = jax.random.normal(xkey, (BATCH, Z_DIM, 1, 1), jnp.float32)

    out = generator_forward(params, x, ALPHA, STEPS)
    out = jax.block_until_ready(out)

    expected = (BATCH, IMG_CHANNELS, 4 * (2 ** STEPS), 4 * (2 ** STEPS))
    assert out.shape == expected, (out.shape, expected)
    assert out.dtype == jnp.float32
    assert bool(jnp.all(jnp.isfinite(out)))
    print("KERNEL_OK")
</pallas_src>

<mosaic_0001>
module attributes {stable_mosaic.version = 11 : i64} {
  func.func @_dense_kernel(%arg0: i32, %arg1: memref<8x32xbf16, #tpu.memory_space<vmem>>, %arg2: memref<32x512xbf16, #tpu.memory_space<vmem>>, %arg3: memref<1x512xf32, #tpu.memory_space<vmem>>, %arg4: memref<8x512xbf16, #tpu.memory_space<vmem>>) attributes {dimension_semantics = [#tpu.dimension_semantics<parallel>], iteration_bounds = array<i64: 1>, scalar_prefetch = 0 : i64, scratch_operands = 0 : i64, tpu.core_type = #tpu.core_type<tc>, window_params = [{transform_indices = @transform_0, window_bounds = array<i64: 8, 32>}, {pipeline_mode = #tpu.pipeline_mode<synchronous>, transform_indices = @transform_1, window_bounds = array<i64: 32, 512>}, {pipeline_mode = #tpu.pipeline_mode<synchronous>, transform_indices = @transform_2, window_bounds = array<i64: 1, 512>}, {transform_indices = @transform_3, window_bounds = array<i64: 8, 512>}]} {
    %c0 = arith.constant 0 : index
    %c0_0 = arith.constant 0 : index
    %0 = vector.load %arg1[%c0, %c0_0] : memref<8x32xbf16, #tpu.memory_space<vmem>>, vector<8x32xbf16>
    %1 = arith.extf %0 : vector<8x32xbf16> to vector<8x32xf32>
    %2 = arith.mulf %1, %1 : vector<8x32xf32>
    %cst = arith.constant dense<0.000000e+00> : vector<8xf32>
    %3 = vector.multi_reduction <add>, %2, %cst [1] : vector<8x32xf32> to vector<8xf32>
    %4 = vector.shape_cast %3 : vector<8xf32> to vector<8x1xf32>
    %cst_1 = arith.constant 3.200000e+01 : f32
    %5 = vector.broadcast %cst_1 : f32 to vector<8x1xf32>
    %6 = arith.divf %4, %5 : vector<8x1xf32>
    %cst_2 = arith.constant 9.99999993E-9 : f32
    %7 = vector.broadcast %cst_2 : f32 to vector<8x1xf32>
    %8 = arith.addf %6, %7 : vector<8x1xf32>
    %9 = math.rsqrt %8 : vector<8x1xf32>
    %10 = vector.broadcast %9 : vector<8x1xf32> to vector<8x32xf32>
    %11 = arith.mulf %1, %10 : vector<8x32xf32>
    %12 = arith.truncf %11 : vector<8x32xf32> to vector<8x32xbf16>
    %c0_3 = arith.constant 0 : index
    %c0_4 = arith.constant 0 : index
    %13 = vector.load %arg2[%c0_3, %c0_4] : memref<32x512xbf16, #tpu.memory_space<vmem>>, vector<32x512xbf16>
    %cst_5 = arith.constant dense<0.000000e+00> : vector<8x512xf32>
    %14 = tpu.matmul %12, %13, %cst_5 {dimension_numbers = #tpu.dot_dimension_numbers<[1], [0], [0], [1], [0, 0, 1, 1], [], []>} : vector<8x32xbf16>, vector<32x512xbf16>, vector<8x512xf32> -> vector<8x512xf32>
    %c0_6 = arith.constant 0 : index
    %c0_7 = arith.constant 0 : index
    %15 = vector.load %arg3[%c0_6, %c0_7] : memref<1x512xf32, #tpu.memory_space<vmem>>, vector<1x512xf32>
    %16 = vector.broadcast %15 : vector<1x512xf32> to vector<8x512xf32>
    %17 = arith.addf %14, %16 : vector<8x512xf32>
    %cst_8 = arith.constant 0.000000e+00 : f32
    %18 = vector.broadcast %cst_8 : f32 to vector<8x512xf32>
    %19 = arith.cmpf oge, %17, %18 : vector<8x512xf32>
    %cst_9 = arith.constant 2.000000e-01 : f32
    %20 = vector.broadcast %cst_9 : f32 to vector<8x512xf32>
    %21 = arith.mulf %20, %17 : vector<8x512xf32>
    %22 = arith.select %19, %17, %21 : vector<8x512xi1>, vector<8x512xf32>
    %23 = arith.truncf %22 : vector<8x512xf32> to vector<8x512xbf16>
    %c0_10 = arith.constant 0 : index
    %c0_11 = arith.constant 0 : index
    %24 = vector.load %arg4[%c0_10, %c0_11] : memref<8x512xbf16, #tpu.memory_space<vmem>>, vector<8x512xbf16>
    tpu.vector_store %arg4[%c0_10, %c0_11], %23 {strides = array<i32>} : memref<8x512xbf16, #tpu.memory_space<vmem>>, vector<8x512xbf16>,
    return
  }
  func.func @transform_0(%arg0: i32) -> (i32, i32) {
    %c0_i32 = arith.constant 0 : i32
    %c0_i32_0 = arith.constant 0 : i32
    return %arg0, %c0_i32 : i32, i32
  }
  func.func @transform_1(%arg0: i32) -> (i32, i32) {
    %c0_i32 = arith.constant 0 : i32
    %c0_i32_0 = arith.constant 0 : i32
    %c0_i32_1 = arith.constant 0 : i32
    return %c0_i32, %c0_i32_0 : i32, i32
  }
  func.func @transform_2(%arg0: i32) -> (i32, i32) {
    %c0_i32 = arith.constant 0 : i32
    %c0_i32_0 = arith.constant 0 : i32
    %c0_i32_1 = arith.constant 0 : i32
    return %c0_i32, %c0_i32_0 : i32, i32
  }
  func.func @transform_3(%arg0: i32) -> (i32, i32) {
    %c0_i32 = arith.constant 0 : i32
    %c0_i32_0 = arith.constant 0 : i32
    return %arg0, %c0_i32 : i32, i32
  }
}

</mosaic_0001>

<bundles_post_ra>
// kernel: tpu_custom_call.1
= control target key start
LH: loop header
LB: loop body
LE: loop exit
PB: predicated region body
PF: predicated region fallthrough
CT: control target
= control target key end

     0   :  { %8 = vsyncpa [#allocation3], 0  ;;  %s437_s0 = inlined_call_operand.hbm [shape: bf16[8,32], index: 0, kind: input, shape index: {}]   ;;  %s438_s1 = inlined_call_operand.hbm [shape: bf16[32,512], index: 1, kind: input, shape index: {}]   ;;  %s439_s2 = inlined_call_operand.vmem [shape: f32[1,512], index: 2, kind: input, shape index: {}]   ;;  %s440_s3 = inlined_call_operand.hbm [shape: bf16[8,512], index: 3, kind: output, shape index: {}]  }
   0x1   :  { %9 = vsyncpa [#allocation6], 0 }
   0x2   :  { %10 = vsyncpa [#allocation4], 0  ;;  %s362_s12 = smov [#allocation2]   ;;  %s363_s14 = smov [#allocation5]  }
   0x3   :  { %s17_s13 = sshll.u32 %s362_s12, 4  ;;  %s26_s15 = sshll.u32 %s363_s14, 4  ;;  %s18_s13 = int_to_ptr.vmem [resolvable:$true] %s17_s13  ;;  %s388_s15 = int_to_ptr.vmem [resolvable:$true] %s26_s15 }
   0x4   :  { %s290_s18 = scalar_lea.hbm %s437_s0, 64 }
   0x5   :  { %p291_p0 = scmp.ne.s32.totalorder %s437_s0, %s290_s18  ;;  %p294_p1 = scmp.lt.u32.totalorder %s290_s18, %s437_s0 }
   0x7   :  { %p296_p2 = pnand %p294_p1, %p291_p0 }
   0x9   :  { %299 = shalt.err (!%p296_p2)
}
   0xa   :  { %s300_s23 = scalar_lea.vmem %s18_s13, 64  ;;  %p305_p4 = scmp.lt.s32.totalorder %s18_s13, %s18_s13 }
   0xb   :  { %p301_p3 = scmp.ne.s32.totalorder %s18_s13, %s300_s23  ;;  %p306_p5 = scmp.lt.s32.totalorder %s300_s23, %s300_s23 }
   0xd   :  { %p307_p6 = por %p306_p5, %p305_p4 }
   0xf   :  { %p308_p7 = pnand %p307_p6, %p301_p3 }
  0x11   :  { %311 = shalt.err (!%p308_p7)
}
  0x12   :  { %20 = dma.hbm_to_vmem [thread:$0]  %s437_s0, 64, %s18_s13, [#allocation3]  }
  0x13   :  { %s312_s28 = scalar_lea.hbm %s438_s1, 1024 }
  0x14   :  { %p313_p8 = scmp.ne.s32.totalorder %s438_s1, %s312_s28  ;;  %p316_p9 = scmp.lt.u32.totalorder %s312_s28, %s438_s1 }
  0x16   :  { %p318_p10 = pnand %p316_p9, %p313_p8 }
  0x18   :  { %321 = shalt.err (!%p318_p10)
}
  0x19   :  { %s322_s6 = scalar_lea.vmem %s388_s15, 1024  ;;  %p327_p12 = scmp.lt.s32.totalorder %s388_s15, %s388_s15 }
  0x1a   :  { %p323_p11 = scmp.ne.s32.totalorder %s388_s15, %s322_s6  ;;  %p328_p13 = scmp.lt.s32.totalorder %s322_s6, %s322_s6 }
  0x1c   :  { %p329_p0 = por %p328_p13, %p327_p12 }
  0x1e   :  { %p330_p1 = pnand %p329_p0, %p323_p11 }
  0x20   :  { %333 = shalt.err (!%p330_p1)
}
  0x21   :  { %s364_s0 = smov 256   ;;  %s365_s7 = smov 16  }
  0x22   :  { %32 = dma.hbm_to_vmem [thread:$0]  %s438_s1, 1024, %s388_s15, [#allocation6], %s364_s0, %s364_s0, %s365_s7  }
  0x23   :  { %356 = dma.done.wait [#allocation3], 64  }
  0x24   :  { %357 = vsyncadd [#allocation3], 4294967232 }
  0x25   :  { %358 = dma.done.wait [#allocation6], 1024  }
  0x26   :  { %359 = vsyncadd [#allocation6], 4294966272  ;;  %v42_v0 = vld [vmem:[#allocation2] sm:$0xf]  ;;  %vm45_vm0 = vcmask 261120   ;;  %v366_v12 = vmov 0   ;;  %v65_v19 = vlaneseq }
  0x27   :  { %v43_v1 = vunpack.c.l.bf16 %v42_v0  ;;  %v276_v4 = vld [vmem:[#allocation5 + $0x4] ss:$16 sps:$4 sm:$0xff]   ;;  %v278_v5 = vld [vmem:[#allocation5 + $0xc] ss:$16 sps:$4 sm:$0xff]   ;;  %v280_v6 = vld [vmem:[#allocation5] ss:$16 sps:$4 sm:$0xff]   ;;  %160 = vmatprep.mubr.bf16.mxu0 %v366_v12  ;;  %201 = vmatprep.mubr.bf16.mxu1 %v366_v12 }
  0x28   :  { %v281_v7 = vld [vmem:[#allocation5 + $0x8] ss:$16 sps:$4 sm:$0xff]   ;;  %v282_v8 = vld [vmem:[#allocation5 + $0x24] ss:$16 sps:$4 sm:$0xff]   ;;  %v284_v9 = vld [vmem:[#allocation5 + $0x2c] ss:$16 sps:$4 sm:$0xff]   ;;  %128 = vmatprep.subr.bf16.mxu0 %v276_v4  ;;  %169 = vmatprep.subr.bf16.mxu1 %v278_v5 }
  0x29   :  { %v44_v2 = vmul.f32 %v43_v1, %v43_v1  ;;  %129 = vmatpush1.bf16.msra.mxu0 %v280_v6  ;;  %170 = vmatpush1.bf16.msra.mxu1 %v281_v7  ;;  %v286_v10 = vld [vmem:[#allocation5 + $0x20] ss:$16 sps:$4 sm:$0xff]   ;;  %v287_v11 = vld [vmem:[#allocation5 + $0x28] ss:$16 sps:$4 sm:$0xff]   ;;  %v66_v20 = vshrl.u32 %v65_v19, 7  ;;  %s367_s11 = smov [#allocation7]  }
  0x2a   :  { %130 = vmatprep.subr.bf16.mxu0 %v282_v8  ;;  %171 = vmatprep.subr.bf16.mxu1 %v284_v9  ;;  %v63_v23 = vld [vmem:[%s439_s2] sm:$0xf]  ;;  %s246_s12 = sshll.u32 %s367_s11, 4  ;;  %s247_s12 = int_to_ptr.vmem [resolvable:$true] %s246_s12 }
  0x2b   :  { %v46_v3 = vsel %vm45_vm0, %v44_v2, 0.0  ;;  %v67_v21 = vsub.s32 0, %v66_v20  ;;  %v75_v22 = vsub.s32 2, %v66_v20  ;;  %v71_v24 = vsub.s32 1, %v66_v20  ;;  %s334_s2 = scalar_lea.vmem %s247_s12, 256  ;;  %p339_p3 = scmp.lt.s32.totalorder %s247_s12, %s247_s12 }
  0x2c   :  { %47 = vadd.xlane.f32.xlu0 %v46_v3  ;;  %v79_v25 = vsub.s32 3, %v66_v20  ;;  %p335_p2 = scmp.ne.s32.totalorder %s247_s12, %s334_s2  ;;  %p340_p4 = scmp.lt.s32.totalorder %s334_s2, %s334_s2 }
  0x2d   :  { %131 = vmatpush1.bf16.msra.mxu0 %v286_v10  ;;  %172 = vmatpush1.bf16.msra.mxu1 %v287_v11  ;;  %v68_v26 = vrot.slane %v63_v23, %v67_v21  ;;  %v76_v27 = vrot.slane %v63_v23, %v75_v22  ;;  %v72_v28 = vrot.slane %v63_v23, %v71_v24 }
  0x2e   :  { %v80_v29 = vrot.slane %v63_v23, %v79_v25  ;;  %p341_p5 = por %p340_p4, %p339_p3 }
  0x30   :  { %p342_p6 = pnand %p341_p5, %p335_p2 }
  0xb9   :  { %v48_v13 = vpop.xlane.xlu0 %47 }
  0xba   :  { %v50_v14 = vmul.f32 0.03125, %v48_v13 }
  0xbc   :  { %v51_v15 = vadd.f32 1e-08, %v50_v14 }
  0xbe   :  { %288 = vrsqrt.f32 %v51_v15 }
  0xc8   :  { %v289_v16 = vpop.eup %288 }
  0xc9   :  { %v53_v17 = vmul.f32 %v289_v16, %v43_v1 }
  0xcb   :  { %v54_v18 = vpack.c.bf16 %v53_v17, %v53_v17 }
  0xcd   :  { %264 = vmatmul.mubr.msk.bf16.vlgmr.msra.gmra.mrb[0].mxu0 %vm45_vm0, %v54_v18  ;;  %265 = vmatmul.mubr.msk.bf16.vlgmr.msra.gmra.mrb[0].mxu1 %vm45_vm0, %v54_v18 }
 0x1a0   :  { %v162_v30 = vpop.f32.mrb[0].mxu0  ;;  %v203_v31 = vpop.f32.mrb[0].mxu1 }
 0x1a1   :  { %v163_v32 = vadd.f32 %v162_v30, %v68_v26  ;;  %v204_v33 = vadd.f32 %v203_v31, %v76_v27  ;;  %v164_v34 = vpop.f32.mrb[1].mxu0  ;;  %v205_v35 = vpop.f32.mrb[1].mxu1 }
 0x1a2   :  { %v165_v36 = vadd.f32 %v164_v34, %v72_v28  ;;  %v206_v37 = vadd.f32 %v205_v35, %v80_v29  ;;  %v166_v38 = vpop.f32.mrb[2].mxu0  ;;  %v207_v39 = vpop.f32.mrb[2].mxu1 }
 0x1a3   :  { %vm210_vm1 = vcmp.ge.f32.partialorder %v163_v32, 0.0  ;;  %v214_v40 = vmul.f32 0.2, %v163_v32  ;;  %vm212_vm2 = vcmp.ge.f32.partialorder %v204_v33, 0.0  ;;  %v216_v41 = vmul.f32 0.2, %v204_v33 }
 0x1a4   :  { %vm211_vm3 = vcmp.ge.f32.partialorder %v165_v36, 0.0  ;;  %v215_v42 = vmul.f32 0.2, %v165_v36  ;;  %vm213_vm4 = vcmp.ge.f32.partialorder %v206_v37, 0.0  ;;  %v217_v43 = vmul.f32 0.2, %v206_v37 }
 0x1a5   :  { %v218_v44 = vsel %vm210_vm1, %v163_v32, %v214_v40  ;;  %v220_v45 = vsel %vm212_vm2, %v204_v33, %v216_v41  ;;  %v167_v46 = vpop.f32.mrb[3].mxu0  ;;  %v208_v47 = vpop.f32.mrb[3].mxu1 }
 0x1a6   :  { %v219_v48 = vsel %vm211_vm3, %v165_v36, %v215_v42  ;;  %v221_v49 = vsel %vm213_vm4, %v206_v37, %v217_v43 }
 0x1a7   :  { %v268_v50 = vpack.c.bf16 %v219_v48, %v218_v44  ;;  %v269_v51 = vpack.c.bf16 %v221_v49, %v220_v45 }
 0x1a9   :  { %238 = vst [vmem:[#allocation7] sm:$0xff] %v268_v50  ;;  %239 = vst [vmem:[#allocation7 + $0x8] sm:$0xff] %v269_v51 }
 0x1aa   :  { %345 = shalt.err (!%p342_p6)
}
 0x1ab   :  { %s346_s15 = scalar_lea.hbm %s440_s3, 256 }
 0x1ac   :  { %p347_p7 = scmp.ne.s32.totalorder %s440_s3, %s346_s15  ;;  %p350_p8 = scmp.lt.u32.totalorder %s346_s15, %s440_s3 }
 0x1ae   :  { %p352_p9 = pnand %p350_p8, %p347_p7 }
 0x1b0   :  { %355 = shalt.err (!%p352_p9)
}
 0x1b1   :  { %249 = dma.vmem_to_hbm [thread:$0]  %s247_s12, 256, %s440_s3, [#allocation4]  }
 0x1b2   :  { %360 = dma.done.wait [#allocation4], 256  }
 0x1b3   :  { %361 = vsyncadd [#allocation4], 4294967040 }
 0x1b4   :  { %253 = vsyncpa [#allocation3], 1 }
 0x1b5   :  { %254 = vsyncpa [#allocation6], 1 }
 0x1b6   :  { %255 = vsyncpa [#allocation4], 1 }

</bundles_post_ra>
